<compile_context>
chip_gen: v7x
topology: tpu7x:2x2x1
jax: 0.10.0
libtpu: 0.0.40
codegen_flags: <defaults>
</compile_context>

<pallas_src>
import jax
import jax.numpy as jnp
from jax.experimental import pallas as pl
from jax.experimental.pallas import tpu as pltpu


def _mean_kernel(x_ref, w_ref, b_ref, mean_ref):
    # One batch tile: [TB, Din] @ [Din, Dout] + [1, Dout] -> [TB, Dout]
    mean = jnp.dot(x_ref[...], w_ref[...], preferred_element_type=jnp.float32)
    mean_ref[...] = (mean + b_ref[...]).astype(mean_ref.dtype)


# VMEM budget for the double-buffered x/mean blocks.  Kept well under the
# v7x scoped default (32 MiB of 64 MiB physical); v5e/v6e have more headroom.
_VMEM_BUDGET_BYTES = 24 << 20
_VMEM_LIMIT_BYTES = 32 << 20


def _choose_batch_tile(B, Din, Dout, itemsize, batch_tile):
    # Cap tile so double-buffered x + mean blocks fit the per-generation budget.
    per_row = 2 * (Din + Dout) * itemsize          # double-buffered in + out
    cap = max(8, (_VMEM_BUDGET_BYTES // per_row) // 8 * 8)
    tb_cap = max(8, min(batch_tile, cap) // 8 * 8)

    if B <= tb_cap:
        # Single block covering the whole batch; block dims equal the full
        # array dims so the (8,128) rule is satisfied even for ragged B.
        return B, 1

    # Grid over the batch.  Tile is a multiple of 8; ragged last block is
    # masked by Pallas.  Prefer >= 4 grid steps so v7x megacore sharding
    # (two TensorCores) actually splits the work.
    tb = tb_cap
    if pl.cdiv(B, tb) < 4:
        tb = max(8, ((pl.cdiv(B, 4) + 7) // 8) * 8)
    return tb, pl.cdiv(B, tb)


def gaussian_forward(x, w_t, bias, log_std, *, batch_tile=32768):
    """x: [B, Din], w_t: [Din, Dout], bias: [Dout], log_std: [Dout].

    Returns (mean, std):
      mean: [B, Dout]  — computed by the Pallas kernel
      std:  [Dout]     — exp(log_std); batch-independent, broadcast by consumer
    """
    B, Din = x.shape
    Dout = w_t.shape[1]
    bias2 = bias.reshape(1, Dout).astype(x.dtype)

    itemsize = jnp.dtype(x.dtype).itemsize
    tb, n_steps = _choose_batch_tile(B, Din, Dout, itemsize, batch_tile)
    grid = (n_steps,)

    cost = pl.CostEstimate(
        flops=2 * B * Din * Dout,
        transcendentals=0,
        bytes_accessed=(B * Din + Din * Dout + Dout + B * Dout) * itemsize,
    )

    mean = pl.pallas_call(
        _mean_kernel,
        out_shape=jax.ShapeDtypeStruct((B, Dout), x.dtype),
        grid_spec=pltpu.PrefetchScalarGridSpec(
            num_scalar_prefetch=0,
            grid=grid,
            in_specs=[
                pl.BlockSpec((tb, Din), lambda i: (i, 0)),    # batch-tiled x
                pl.BlockSpec((Din, Dout), lambda i: (0, 0)),  # weight, resident
                pl.BlockSpec((1, Dout), lambda i: (0, 0)),    # bias, resident
            ],
            out_specs=pl.BlockSpec((tb, Dout), lambda i: (i, 0)),
        ),
        compiler_params=pltpu.CompilerParams(
            dimension_semantics=("parallel",),   # shard batch grid across TCs (v7x)
            vmem_limit_bytes=_VMEM_LIMIT_BYTES,
        ),
        cost_estimate=cost,
    )(x, w_t, bias2)

    # Rank-1 std; the Normal-distribution consumer broadcasts it lazily.
    std = jnp.exp(log_std.astype(jnp.float32)).astype(x.dtype)
    return mean, std


def orthogonal_init(key, rows, cols, gain=1.0, dtype=jnp.float32):
    """Deterministic orthogonal init (matches nn.init.orthogonal_ semantics)."""
    n = max(rows, cols)
    a = jax.random.normal(key, (n, n), dtype=jnp.float32)
    q, r = jnp.linalg.qr(a)
    d = jnp.diag(r)
    # Sign correction so the decomposition is unique (avoid zeroing on d == 0).
    q = q * jnp.where(d >= 0, 1.0, -1.0)[None, :]
    return (gain * q[:rows, :cols]).astype(dtype)


if __name__ == "__main__":
    num_inputs, num_outputs = 32, 8
    key = jax.random.PRNGKey(0)
    k_x, k_w, k_x2 = jax.random.split(key, 3)

    # Parameters (deterministic, matching __init__):
    w = orthogonal_init(k_w, num_outputs, num_inputs)   # [Dout, Din] (PyTorch layout)
    w_t = w.T                                            # [Din, Dout] for the kernel
    bias = jnp.zeros((num_outputs,), jnp.float32)        # Linear bias, constant 0
    log_std = jnp.zeros((num_outputs,), jnp.float32)     # AddBias param, init 0

    # --- main test: module-sized small batch ---
    batch = 2
    x = jax.random.normal(k_x, (batch, num_inputs), dtype=jnp.float32)
    mean, std = gaussian_forward(x, w_t, bias, log_std)
    jax.block_until_ready((mean, std))

    mean_ref = x @ w_t + bias[None, :]
    std_full_ref = jnp.exp(jnp.zeros_like(mean_ref) + log_std[None, :])
    assert mean.shape == (batch, num_outputs) and std.shape == (num_outputs,)
    assert jnp.allclose(mean, mean_ref, atol=1e-5, rtol=1e-5)
    # std broadcast against mean reproduces the [B, Dout] PyTorch std exactly.
    assert jnp.allclose(jnp.broadcast_to(std[None, :], mean.shape), std_full_ref,
                        atol=1e-6, rtol=1e-6)

    # --- tail-block test: ragged batch with a multi-step grid (masked last block) ---
    B2 = 100
    x2 = jax.random.normal(k_x2, (B2, num_inputs), dtype=jnp.float32)
    mean2, std2 = gaussian_forward(x2, w_t, bias, log_std, batch_tile=32)
    jax.block_until_ready((mean2, std2))
    mean2_ref = x2 @ w_t + bias[None, :]
    assert mean2.shape == (B2, num_outputs)
    assert jnp.allclose(mean2, mean2_ref, atol=1e-5, rtol=1e-5)

    print("KERNEL_OK")
</pallas_src>

<mosaic_0001>
module attributes {stable_mosaic.version = 11 : i64} {
  func.func @_mean_kernel(%arg0: i32, %arg1: memref<2x32xf32, #tpu.memory_space<vmem>>, %arg2: memref<32x8xf32, #tpu.memory_space<vmem>>, %arg3: memref<1x8xf32, #tpu.memory_space<vmem>>, %arg4: memref<2x8xf32, #tpu.memory_space<vmem>>) attributes {dimension_semantics = [#tpu.dimension_semantics<parallel>], iteration_bounds = array<i64: 1>, scalar_prefetch = 0 : i64, scratch_operands = 0 : i64, tpu.core_type = #tpu.core_type<tc>, window_params = [{transform_indices = @transform_0, window_bounds = array<i64: 2, 32>}, {pipeline_mode = #tpu.pipeline_mode<synchronous>, transform_indices = @transform_1, window_bounds = array<i64: 32, 8>}, {pipeline_mode = #tpu.pipeline_mode<synchronous>, transform_indices = @transform_2, window_bounds = array<i64: 1, 8>}, {transform_indices = @transform_3, window_bounds = array<i64: 2, 8>}]} {
    %c0 = arith.constant 0 : index
    %c0_0 = arith.constant 0 : index
    %0 = vector.load %arg1[%c0, %c0_0] : memref<2x32xf32, #tpu.memory_space<vmem>>, vector<2x32xf32>
    %c0_1 = arith.constant 0 : index
    %c0_2 = arith.constant 0 : index
    %1 = vector.load %arg2[%c0_1, %c0_2] : memref<32x8xf32, #tpu.memory_space<vmem>>, vector<32x8xf32>
    %cst = arith.constant dense<0.000000e+00> : vector<2x8xf32>
    %2 = tpu.matmul %0, %1, %cst {dimension_numbers = #tpu.dot_dimension_numbers<[1], [0], [0], [1], [0, 0, 1, 1], [], []>} : vector<2x32xf32>, vector<32x8xf32>, vector<2x8xf32> -> vector<2x8xf32>
    %c0_3 = arith.constant 0 : index
    %c0_4 = arith.constant 0 : index
    %3 = vector.load %arg3[%c0_3, %c0_4] : memref<1x8xf32, #tpu.memory_space<vmem>>, vector<1x8xf32>
    %4 = vector.broadcast %3 : vector<1x8xf32> to vector<2x8xf32>
    %5 = arith.addf %2, %4 : vector<2x8xf32>
    %c0_5 = arith.constant 0 : index
    %c0_6 = arith.constant 0 : index
    %6 = vector.load %arg4[%c0_5, %c0_6] : memref<2x8xf32, #tpu.memory_space<vmem>>, vector<2x8xf32>
    tpu.vector_store %arg4[%c0_5, %c0_6], %5 {strides = array<i32>} : memref<2x8xf32, #tpu.memory_space<vmem>>, vector<2x8xf32>,
    return
  }
  func.func @transform_0(%arg0: i32) -> (i32, i32) {
    %c0_i32 = arith.constant 0 : i32
    %c0_i32_0 = arith.constant 0 : i32
    return %arg0, %c0_i32 : i32, i32
  }
  func.func @transform_1(%arg0: i32) -> (i32, i32) {
    %c0_i32 = arith.constant 0 : i32
    %c0_i32_0 = arith.constant 0 : i32
    %c0_i32_1 = arith.constant 0 : i32
    return %c0_i32, %c0_i32_0 : i32, i32
  }
  func.func @transform_2(%arg0: i32) -> (i32, i32) {
    %c0_i32 = arith.constant 0 : i32
    %c0_i32_0 = arith.constant 0 : i32
    %c0_i32_1 = arith.constant 0 : i32
    return %c0_i32, %c0_i32_0 : i32, i32
  }
  func.func @transform_3(%arg0: i32) -> (i32, i32) {
    %c0_i32 = arith.constant 0 : i32
    %c0_i32_0 = arith.constant 0 : i32
    return %arg0, %c0_i32 : i32, i32
  }
}

</mosaic_0001>

<bundles_post_ra>
// kernel: tpu_custom_call.1
= control target key start
LH: loop header
LB: loop body
LE: loop exit
PB: predicated region body
PF: predicated region fallthrough
CT: control target
= control target key end

     0   :  { %v169_v3 = vmov 0.0|0.0   ;;  %vm170_vm0 = vmmov 0   ;;  %v171_v6 = vmov 0.0   ;;  %s223_s0 = inlined_call_operand.vmem [shape: f32[2,32], index: 0, kind: input, shape index: {}]   ;;  %s224_s1 = inlined_call_operand.vmem [shape: f32[32,8], index: 1, kind: input, shape index: {}]   ;;  %s225_s2 = inlined_call_operand.vmem [shape: f32[1,8], index: 2, kind: input, shape index: {}]   ;;  %s226_s3 = inlined_call_operand.hbm [shape: f32[2,8], index: 3, kind: output, shape index: {}]  }
   0x1   :  { %v16_v0 = vld [vmem:[%s224_s1] sm:$0xff]  ;;  %v17_v1 = vld [vmem:[%s224_s1 + $0x8] sm:$0xff]  ;;  %v18_v2 = vld [vmem:[%s224_s1 + $0x10] sm:$0xff]  ;;  %135 = vmatprep.subr.bf16.mxu0 %v169_v3  ;;  %132 = vmatprep.mubr.msk.f32.mxu0 %vm170_vm0, %v171_v6 }
   0x2   :  { %v136_v4 = vpack.c.bf16 %v17_v1, %v16_v0  ;;  %v19_v5 = vld [vmem:[%s224_s1 + $0x18] sm:$0xff] }
   0x3   :  { %8 = vsyncpa [#allocation3], 0  ;;  %v139_v7 = vpack.c.bf16 %v19_v5, %v18_v2  ;;  %v15_v8 = vld [vmem:[%s223_s0] sm:$0x3]  ;;  %vm27_vm1 = vcmask 261120   ;;  %s172_s24 = smov [#allocation2]  }
   0x4   :  { %137 = vmatpush3.bf16.msra.mxu0 %v136_v4  ;;  %v117_v9 = vld [vmem:[%s225_s2] ss:$0 sm:$0xff]  ;;  %s109_s1 = sshll.u32 %s172_s24, 4  ;;  %vm101_vm2 = vcmask 58368   ;;  %s110_s1 = int_to_ptr.vmem [resolvable:$true] %s109_s1 }
   0x5   :  { %138 = vmatprep.subr.bf16.mxu0 %v169_v3  ;;  %s145_s25 = scalar_lea.vmem %s110_s1, 32  ;;  %p150_p1 = scmp.lt.s32.totalorder %s110_s1, %s110_s1 }
   0x6   :  { %p146_p0 = scmp.ne.s32.totalorder %s110_s1, %s145_s25  ;;  %p151_p2 = scmp.lt.s32.totalorder %s145_s25, %s145_s25 }
   0x8   :  { %140 = vmatpush3.bf16.msra.mxu0 %v139_v7  ;;  %p152_p3 = por %p151_p2, %p150_p1 }
   0xa   :  { %p153_p4 = pnand %p152_p3, %p146_p0 }
   0xb   :  { %133 = vmatmul.mubr.msk.f32.vlgmr.msra.gmra.mrb[0].mxu0 %vm27_vm1, %v15_v8 }
  0xde   :  { %v97_v10 = vpop.f32.mrb[0].mxu0 }
  0xdf   :  { %v98_v11 = vadd.f32 %v117_v9, %v97_v10  ;;  %v134_v12 = vpop.f32.mrb[1].mxu0 }
  0xe1   :  { %102 = vst.msk [vmem:[#allocation2] sm:$0x3] %vm101_vm2, %v98_v11 }
  0xe2   :  { %156 = shalt.err (!%p153_p4)
}
  0xe3   :  { %s157_s27 = scalar_lea.hbm %s226_s3, 32 }
  0xe4   :  { %p158_p5 = scmp.ne.s32.totalorder %s226_s3, %s157_s27  ;;  %p161_p6 = scmp.lt.u32.totalorder %s157_s27, %s226_s3 }
  0xe6   :  { %p163_p7 = pnand %p161_p6, %p158_p5 }
  0xe8   :  { %166 = shalt.err (!%p163_p7)
}
  0xe9   :  { %112 = dma.vmem_to_hbm [thread:$0]  %s110_s1, 32, %s226_s3, [#allocation3]  }
  0xea   :  { %167 = dma.done.wait [#allocation3], 32  }
  0xeb   :  { %168 = vsyncadd [#allocation3], 4294967264 }
  0xec   :  { %116 = vsyncpa [#allocation3], 1 }

</bundles_post_ra>
